<compile_context>
chip_gen: v7x
topology: tpu7x:2x2x1
jax: 0.10.0
libtpu: 0.0.40
codegen_flags: <defaults>
</compile_context>

<pallas_src>
import functools

import jax
import jax.numpy as jnp
from jax.experimental import pallas as pl
from jax.experimental.pallas import tpu as pltpu


def _ceil_to(x, m):
    return ((x + m - 1) // m) * m


# ---------------------------------------------------------------------------
# Kernel: whole sequence, one grid step per timestep, weights VMEM-resident.
# ---------------------------------------------------------------------------
def gru_seq_kernel(x_ref, h0_ref, wx_ref, bx_ref, wh_ref, bhn_ref, wfh_ref,
                   out_ref, hT_ref, h_scr):
    """One GRU timestep per grid iteration.

    x_ref  : (Bp, Ip)          x_t (leading T dim squeezed by BlockSpec)
    h0_ref : (Bp, Hp)          initial hidden state (read only at t == 0)
    wx_ref : (Ip, 3*Hp + Op)   fused x-path weights [W_ir | W_iz | W_in | W_fcx]
    bx_ref : (1, 3*Hp + Op)    fused x-path bias [b_ir+b_hr | b_iz+b_hz | b_in | b_fc]
    wh_ref : (Hp, 3*Hp)        h-path weights [W_hr | W_hz | W_hn]
    bhn_ref: (1, Hp)           b_hn (kept separate: it is scaled by r)
    wfh_ref: (Hp, Op)          fc weight slice acting on h_new
    out_ref: (Bp, Op)          out_t
    hT_ref : (Bp, Hp)          final hidden state (written on last step)
    h_scr  : (Bp, Hp) f32      VMEM carry for the recurrence
    """
    t = pl.program_id(0)
    Hp = h_scr.shape[1]

    @pl.when(t == 0)
    def _():
        h_scr[...] = h0_ref[...].astype(jnp.float32)

    x = x_ref[...].astype(jnp.float32)        # (Bp, Ip)
    h = h_scr[...]                            # (Bp, Hp) f32

    # Fused x-path matmul: gates r/z/n and the fc-x contribution in one MXU op.
    gx = jnp.dot(x, wx_ref[...], preferred_element_type=jnp.float32) + bx_ref[...]
    gh = jnp.dot(h, wh_ref[...], preferred_element_type=jnp.float32)

    # All slice boundaries are multiples of 128 lanes (Hp = Op = 128).
    x_r = gx[:, 0:Hp]
    x_z = gx[:, Hp:2 * Hp]
    x_n = gx[:, 2 * Hp:3 * Hp]
    x_o = gx[:, 3 * Hp:]

    h_r = gh[:, 0:Hp]
    h_z = gh[:, Hp:2 * Hp]
    h_n = gh[:, 2 * Hp:3 * Hp]

    r = jax.nn.sigmoid(x_r + h_r)
    z = jax.nn.sigmoid(x_z + h_z)
    n = jnp.tanh(x_n + r * (h_n + bhn_ref[...]))
    h_new = (1.0 - z) * n + z * h

    out = x_o + jnp.dot(h_new, wfh_ref[...], preferred_element_type=jnp.float32)

    h_scr[...] = h_new
    out_ref[...] = out.astype(out_ref.dtype)          # lane-dense (Op = 128)

    @pl.when(t == pl.num_programs(0) - 1)
    def _():
        hT_ref[...] = h_new.astype(hT_ref.dtype)      # lane-dense (Hp = 128)


# ---------------------------------------------------------------------------
# Wrappers
# ---------------------------------------------------------------------------
def gru_sequence(xs, h0, packed):
    """Run the GRU cell over a whole sequence in ONE pallas_call.

    xs: (T, B, I), h0: (B, H)  ->  (outs (T, B, O), h_T (B, H))
    """
    T, B, I = xs.shape
    H = h0.shape[1]
    _, _, O, Ip, Hp, Op = packed["dims"]
    Bp = _ceil_to(max(B, 8), 8)          # fill sublanes

    xs_p = jnp.pad(xs, ((0, 0), (0, Bp - B), (0, Ip - I)))
    h0_p = jnp.pad(h0, ((0, Bp - B), (0, Hp - H)))

    flops = int(2 * T * Bp * (Ip * (3 * Hp + Op) + Hp * (3 * Hp) + Hp * Op))
    transcendentals = int(T * Bp * 3 * Hp)
    bytes_accessed = int(4 * (xs_p.size + h0_p.size
                              + packed["wx"].size + packed["bx"].size
                              + packed["wh"].size + packed["bhn"].size
                              + packed["wfh"].size
                              + T * Bp * Op + Bp * Hp))

    outs_p, hT_p = pl.pallas_call(
        gru_seq_kernel,
        out_shape=(
            jax.ShapeDtypeStruct((T, Bp, Op), xs.dtype),
            jax.ShapeDtypeStruct((Bp, Hp), xs.dtype),
        ),
        grid_spec=pltpu.PrefetchScalarGridSpec(
            num_scalar_prefetch=0,
            grid=(T,),
            in_specs=[
                pl.BlockSpec((None, Bp, Ip), lambda t: (t, 0, 0)),     # x_t
                pl.BlockSpec((Bp, Hp), lambda t: (0, 0)),              # h0
                pl.BlockSpec((Ip, 3 * Hp + Op), lambda t: (0, 0)),     # wx (resident)
                pl.BlockSpec((1, 3 * Hp + Op), lambda t: (0, 0)),      # bx (resident)
                pl.BlockSpec((Hp, 3 * Hp), lambda t: (0, 0)),          # wh (resident)
                pl.BlockSpec((1, Hp), lambda t: (0, 0)),               # bhn (resident)
                pl.BlockSpec((Hp, Op), lambda t: (0, 0)),              # wfh (resident)
            ],
            out_specs=(
                pl.BlockSpec((None, Bp, Op), lambda t: (t, 0, 0)),     # out_t
                pl.BlockSpec((Bp, Hp), lambda t: (0, 0)),              # h_T
            ),
            scratch_shapes=[pltpu.VMEM((Bp, Hp), jnp.float32)],        # h carry
        ),
        compiler_params=pltpu.CompilerParams(
            dimension_semantics=("arbitrary",)),                       # recurrence
        cost_estimate=pl.CostEstimate(
            flops=flops, transcendentals=transcendentals,
            bytes_accessed=bytes_accessed),
    )(xs_p, h0_p, packed["wx"], packed["bx"], packed["wh"],
      packed["bhn"], packed["wfh"])

    return outs_p[:, :B, :O], hT_p[:B, :H]


def gru_forward(x, h, packed):
    """Single step, exactly GRU.forward(x, h) -> (output, h_new)."""
    outs, hT = gru_sequence(x[None], h, packed)
    return outs[0], hT


# ---------------------------------------------------------------------------
# Parameter init (PyTorch layout) and packing into the fused/padded layout.
# ---------------------------------------------------------------------------
def init_params(key, input_size, hidden_size, output_size, dtype=jnp.float32):
    """PyTorch-default init (uniform +-1/sqrt(fan)) in PyTorch layout."""
    ks = jax.random.split(key, 6)
    kg = 1.0 / jnp.sqrt(hidden_size)
    kf = 1.0 / jnp.sqrt(input_size + hidden_size)
    return {
        "w_ih": jax.random.uniform(ks[0], (3 * hidden_size, input_size),
                                   minval=-kg, maxval=kg, dtype=dtype),
        "w_hh": jax.random.uniform(ks[1], (3 * hidden_size, hidden_size),
                                   minval=-kg, maxval=kg, dtype=dtype),
        "b_ih": jax.random.uniform(ks[2], (3 * hidden_size,),
                                   minval=-kg, maxval=kg, dtype=dtype),
        "b_hh": jax.random.uniform(ks[3], (3 * hidden_size,),
                                   minval=-kg, maxval=kg, dtype=dtype),
        "w_fc": jax.random.uniform(ks[4], (output_size, input_size + hidden_size),
                                   minval=-kf, maxval=kf, dtype=dtype),
        "b_fc": jax.random.uniform(ks[5], (output_size,),
                                   minval=-kf, maxval=kf, dtype=dtype),
    }


def pack_params(params, input_size, hidden_size, output_size):
    """Fuse + transpose + zero-pad weights into the kernel layout."""
    I, H, O = input_size, hidden_size, output_size
    Ip, Hp, Op = _ceil_to(I, 128), _ceil_to(H, 128), _ceil_to(O, 128)

    w_ih, w_hh = params["w_ih"], params["w_hh"]
    b_ih, b_hh = params["b_ih"], params["b_hh"]
    w_fc, b_fc = params["w_fc"], params["b_fc"]

    w_ir, w_iz, w_in = w_ih[:H], w_ih[H:2 * H], w_ih[2 * H:]   # (H, I)
    w_hr, w_hz, w_hn = w_hh[:H], w_hh[H:2 * H], w_hh[2 * H:]   # (H, H)
    b_ir, b_iz, b_in = b_ih[:H], b_ih[H:2 * H], b_ih[2 * H:]
    b_hr, b_hz, b_hn = b_hh[:H], b_hh[H:2 * H], b_hh[2 * H:]
    w_fcx, w_fch = w_fc[:, :I], w_fc[:, I:]                    # (O, I), (O, H)

    def pad2(a, rows, cols):
        return jnp.pad(a, ((0, rows - a.shape[0]), (0, cols - a.shape[1])))

    def pad1(v, n):
        return jnp.pad(v, (0, n - v.shape[0]))

    # Fused x-path: [r | z | n | fc_out]  -> (Ip, 3*Hp + Op)
    wx = jnp.concatenate([pad2(w_ir.T, Ip, Hp), pad2(w_iz.T, Ip, Hp),
                          pad2(w_in.T, Ip, Hp), pad2(w_fcx.T, Ip, Op)], axis=1)
    # Fused bias: r/z carry b_ih + b_hh pre-summed; n carries only b_in here.
    bx = jnp.concatenate([pad1(b_ir + b_hr, Hp), pad1(b_iz + b_hz, Hp),
                          pad1(b_in, Hp), pad1(b_fc, Op)])[None, :]
    # h-path: [r | z | n]  -> (Hp, 3*Hp)
    wh = jnp.concatenate([pad2(w_hr.T, Hp, Hp), pad2(w_hz.T, Hp, Hp),
                          pad2(w_hn.T, Hp, Hp)], axis=1)
    bhn = pad1(b_hn, Hp)[None, :]                               # (1, Hp)
    wfh = pad2(w_fch.T, Hp, Op)                                 # (Hp, Op)

    return {"wx": wx, "bx": bx, "wh": wh, "bhn": bhn, "wfh": wfh,
            "dims": (I, H, O, Ip, Hp, Op)}


# ---------------------------------------------------------------------------
# Pure-JAX reference (PyTorch semantics), for correctness checking.
# ---------------------------------------------------------------------------
def gru_reference(xs, h0, params):
    H = h0.shape[1]
    w_ih, w_hh = params["w_ih"], params["w_hh"]
    b_ih, b_hh = params["b_ih"], params["b_hh"]
    w_fc, b_fc = params["w_fc"], params["b_fc"]

    def step(h, x):
        gi = x @ w_ih.T + b_ih
        gh = h @ w_hh.T + b_hh
        r = jax.nn.sigmoid(gi[:, :H] + gh[:, :H])
        z = jax.nn.sigmoid(gi[:, H:2 * H] + gh[:, H:2 * H])
        n = jnp.tanh(gi[:, 2 * H:] + r * gh[:, 2 * H:])
        h_new = (1.0 - z) * n + z * h
        out = jnp.concatenate([x, h_new], axis=1) @ w_fc.T + b_fc
        return h_new, out

    hT, outs = jax.lax.scan(step, h0, xs)
    return outs, hT


if __name__ == "__main__":
    input_size, hidden_size, output_size = 8, 32, 8
    batch, seq = 4, 8

    key = jax.random.PRNGKey(0)
    k_param, k_x, k_h = jax.random.split(key, 3)

    params = init_params(k_param, input_size, hidden_size, output_size)
    packed = pack_params(params, input_size, hidden_size, output_size)

    xs = jax.random.normal(k_x, (seq, batch, input_size), dtype=jnp.float32)
    h0 = jax.random.normal(k_h, (batch, hidden_size), dtype=jnp.float32)  # initHidden()

    # Whole teacher-forced sequence in one kernel launch.
    outs, hT = gru_sequence(xs, h0, packed)
    outs, hT = jax.block_until_ready(outs), jax.block_until_ready(hT)

    outs_ref, hT_ref = gru_reference(xs, h0, params)
    assert jnp.allclose(outs, outs_ref, atol=1e-5, rtol=1e-5)
    assert jnp.allclose(hT, hT_ref, atol=1e-5, rtol=1e-5)

    # Single-step path == GRU.forward(x, h).
    out1, h1 = gru_forward(xs[0], h0, packed)
    out1 = jax.block_until_ready(out1)
    out1_ref, h1_ref = gru_reference(xs[:1], h0, params)
    assert jnp.allclose(out1, out1_ref[0], atol=1e-5, rtol=1e-5)
    assert jnp.allclose(h1, h1_ref, atol=1e-5, rtol=1e-5)

    print("KERNEL_OK")
</pallas_src>

<mosaic_0001>
module attributes {stable_mosaic.version = 11 : i64} {
  func.func @gru_seq_kernel(%arg0: i32, %arg1: memref<1x8x128xf32, #tpu.memory_space<vmem>>, %arg2: memref<8x128xf32, #tpu.memory_space<vmem>>, %arg3: memref<128x512xf32, #tpu.memory_space<vmem>>, %arg4: memref<1x512xf32, #tpu.memory_space<vmem>>, %arg5: memref<128x384xf32, #tpu.memory_space<vmem>>, %arg6: memref<1x128xf32, #tpu.memory_space<vmem>>, %arg7: memref<128x128xf32, #tpu.memory_space<vmem>>, %arg8: memref<1x8x128xf32, #tpu.memory_space<vmem>>, %arg9: memref<8x128xf32, #tpu.memory_space<vmem>>, %arg10: memref<8x128xf32, #tpu.memory_space<vmem>>) attributes {dimension_semantics = [#tpu.dimension_semantics<arbitrary>], iteration_bounds = array<i64: 8>, scalar_prefetch = 0 : i64, scratch_operands = 1 : i64, tpu.core_type = #tpu.core_type<tc>, window_params = [{transform_indices = @transform_0, window_bounds = array<i64: 1, 8, 128>}, {pipeline_mode = #tpu.pipeline_mode<synchronous>, transform_indices = @transform_1, window_bounds = array<i64: 8, 128>}, {pipeline_mode = #tpu.pipeline_mode<synchronous>, transform_indices = @transform_2, window_bounds = array<i64: 128, 512>}, {pipeline_mode = #tpu.pipeline_mode<synchronous>, transform_indices = @transform_3, window_bounds = array<i64: 1, 512>}, {pipeline_mode = #tpu.pipeline_mode<synchronous>, transform_indices = @transform_4, window_bounds = array<i64: 128, 384>}, {pipeline_mode = #tpu.pipeline_mode<synchronous>, transform_indices = @transform_5, window_bounds = array<i64: 1, 128>}, {pipeline_mode = #tpu.pipeline_mode<synchronous>, transform_indices = @transform_6, window_bounds = array<i64: 128, 128>}, {transform_indices = @transform_7, window_bounds = array<i64: 1, 8, 128>}, {pipeline_mode = #tpu.pipeline_mode<synchronous>, transform_indices = @transform_8, window_bounds = array<i64: 8, 128>}]} {
    %c0_i32 = arith.constant 0 : i32
    %0 = arith.cmpi eq, %arg0, %c0_i32 : i32
    %1 = arith.extui %0 : i1 to i32
    %c0_i32_0 = arith.constant 0 : i32
    %2 = arith.cmpi ne, %1, %c0_i32_0 : i32
    scf.if %2 {
      %c0_26 = arith.constant 0 : index
      %c0_27 = arith.constant 0 : index
      %53 = vector.load %arg2[%c0_26, %c0_27] : memref<8x128xf32, #tpu.memory_space<vmem>>, vector<8x128xf32>
      %c0_28 = arith.constant 0 : index
      %c0_29 = arith.constant 0 : index
      %54 = vector.load %arg10[%c0_28, %c0_29] : memref<8x128xf32, #tpu.memory_space<vmem>>, vector<8x128xf32>
      tpu.vector_store %arg10[%c0_28, %c0_29], %53 {strides = array<i32>} : memref<8x128xf32, #tpu.memory_space<vmem>>, vector<8x128xf32>,
    } else {
    }
    %c0 = arith.constant 0 : index
    %c0_1 = arith.constant 0 : index
    %c0_2 = arith.constant 0 : index
    %3 = vector.load %arg1[%c0, %c0_1, %c0_2] : memref<1x8x128xf32, #tpu.memory_space<vmem>>, vector<1x8x128xf32>
    %4 = vector.shape_cast %3 : vector<1x8x128xf32> to vector<8x128xf32>
    %c0_3 = arith.constant 0 : index
    %c0_4 = arith.constant 0 : index
    %5 = vector.load %arg10[%c0_3, %c0_4] : memref<8x128xf32, #tpu.memory_space<vmem>>, vector<8x128xf32>
    %c0_5 = arith.constant 0 : index
    %c0_6 = arith.constant 0 : index
    %6 = vector.load %arg3[%c0_5, %c0_6] : memref<128x512xf32, #tpu.memory_space<vmem>>, vector<128x512xf32>
    %cst = arith.constant dense<0.000000e+00> : vector<8x512xf32>
    %7 = tpu.matmul %4, %6, %cst {dimension_numbers = #tpu.dot_dimension_numbers<[1], [0], [0], [1], [0, 0, 1, 1], [], []>} : vector<8x128xf32>, vector<128x512xf32>, vector<8x512xf32> -> vector<8x512xf32>
    %c0_7 = arith.constant 0 : index
    %c0_8 = arith.constant 0 : index
    %8 = vector.load %arg4[%c0_7, %c0_8] : memref<1x512xf32, #tpu.memory_space<vmem>>, vector<1x512xf32>
    %9 = vector.broadcast %8 : vector<1x512xf32> to vector<8x512xf32>
    %10 = arith.addf %7, %9 : vector<8x512xf32>
    %c0_9 = arith.constant 0 : index
    %c0_10 = arith.constant 0 : index
    %11 = vector.load %arg5[%c0_9, %c0_10] : memref<128x384xf32, #tpu.memory_space<vmem>>, vector<128x384xf32>
    %cst_11 = arith.constant dense<0.000000e+00> : vector<8x384xf32>
    %12 = tpu.matmul %5, %11, %cst_11 {dimension_numbers = #tpu.dot_dimension_numbers<[1], [0], [0], [1], [0, 0, 1, 1], [], []>} : vector<8x128xf32>, vector<128x384xf32>, vector<8x384xf32> -> vector<8x384xf32>
    %13 = vector.extract_strided_slice %10 {offsets = [0, 0], sizes = [8, 128], strides = [1, 1]} : vector<8x512xf32> to vector<8x128xf32>
    %14 = vector.extract_strided_slice %10 {offsets = [0, 128], sizes = [8, 128], strides = [1, 1]} : vector<8x512xf32> to vector<8x128xf32>
    %15 = vector.extract_strided_slice %10 {offsets = [0, 256], sizes = [8, 128], strides = [1, 1]} : vector<8x512xf32> to vector<8x128xf32>
    %16 = vector.extract_strided_slice %10 {offsets = [0, 384], sizes = [8, 128], strides = [1, 1]} : vector<8x512xf32> to vector<8x128xf32>
    %17 = vector.extract_strided_slice %12 {offsets = [0, 0], sizes = [8, 128], strides = [1, 1]} : vector<8x384xf32> to vector<8x128xf32>
    %18 = vector.extract_strided_slice %12 {offsets = [0, 128], sizes = [8, 128], strides = [1, 1]} : vector<8x384xf32> to vector<8x128xf32>
    %19 = vector.extract_strided_slice %12 {offsets = [0, 256], sizes = [8, 128], strides = [1, 1]} : vector<8x384xf32> to vector<8x128xf32>
    %20 = arith.addf %13, %17 : vector<8x128xf32>
    %21 = arith.negf %20 : vector<8x128xf32>
    %22 = math.exp %21 : vector<8x128xf32>
    %cst_12 = arith.constant 1.000000e+00 : f32
    %23 = vector.broadcast %cst_12 : f32 to vector<8x128xf32>
    %24 = arith.addf %23, %22 : vector<8x128xf32>
    %25 = arith.divf %23, %24 : vector<8x128xf32>
    %26 = arith.addf %14, %18 : vector<8x128xf32>
    %27 = arith.negf %26 : vector<8x128xf32>
    %28 = math.exp %27 : vector<8x128xf32>
    %cst_13 = arith.constant 1.000000e+00 : f32
    %29 = vector.broadcast %cst_13 : f32 to vector<8x128xf32>
    %30 = arith.addf %29, %28 : vector<8x128xf32>
    %31 = arith.divf %29, %30 : vector<8x128xf32>
    %c0_14 = arith.constant 0 : index
    %c0_15 = arith.constant 0 : index
    %32 = vector.load %arg6[%c0_14, %c0_15] : memref<1x128xf32, #tpu.memory_space<vmem>>, vector<1x128xf32>
    %33 = vector.broadcast %32 : vector<1x128xf32> to vector<8x128xf32>
    %34 = arith.addf %19, %33 : vector<8x128xf32>
    %35 = arith.mulf %25, %34 : vector<8x128xf32>
    %36 = arith.addf %15, %35 : vector<8x128xf32>
    %37 = math.tanh %36 : vector<8x128xf32>
    %cst_16 = arith.constant 1.000000e+00 : f32
    %38 = vector.broadcast %cst_16 : f32 to vector<8x128xf32>
    %39 = arith.subf %38, %31 : vector<8x128xf32>
    %40 = arith.mulf %39, %37 : vector<8x128xf32>
    %41 = arith.mulf %31, %5 : vector<8x128xf32>
    %42 = arith.addf %40, %41 : vector<8x128xf32>
    %c0_17 = arith.constant 0 : index
    %c0_18 = arith.constant 0 : index
    %43 = vector.load %arg7[%c0_17, %c0_18] : memref<128x128xf32, #tpu.memory_space<vmem>>, vector<128x128xf32>
    %cst_19 = arith.constant dense<0.000000e+00> : vector<8x128xf32>
    %44 = tpu.matmul %42, %43, %cst_19 {dimension_numbers = #tpu.dot_dimension_numbers<[1], [0], [0], [1], [0, 0, 1, 1], [], []>} : vector<8x128xf32>, vector<128x128xf32>, vector<8x128xf32> -> vector<8x128xf32>
    %45 = arith.addf %16, %44 : vector<8x128xf32>
    %c0_20 = arith.constant 0 : index
    %c0_21 = arith.constant 0 : index
    %46 = vector.load %arg10[%c0_20, %c0_21] : memref<8x128xf32, #tpu.memory_space<vmem>>, vector<8x128xf32>
    tpu.vector_store %arg10[%c0_20, %c0_21], %42 {strides = array<i32>} : memref<8x128xf32, #tpu.memory_space<vmem>>, vector<8x128xf32>,
    %c0_22 = arith.constant 0 : index
    %c0_23 = arith.constant 0 : index
    %c0_24 = arith.constant 0 : index
    %47 = vector.load %arg8[%c0_22, %c0_23, %c0_24] : memref<1x8x128xf32, #tpu.memory_space<vmem>>, vector<1x8x128xf32>
    %48 = vector.shape_cast %47 : vector<1x8x128xf32> to vector<8x128xf32>
    %49 = vector.shape_cast %45 : vector<8x128xf32> to vector<1x8x128xf32>
    tpu.vector_store %arg8[%c0_22, %c0_23, %c0_24], %49 {strides = array<i32>} : memref<1x8x128xf32, #tpu.memory_space<vmem>>, vector<1x8x128xf32>,
    %c7_i32 = arith.constant 7 : i32
    %50 = arith.cmpi eq, %arg0, %c7_i32 : i32
    %51 = arith.extui %50 : i1 to i32
    %c0_i32_25 = arith.constant 0 : i32
    %52 = arith.cmpi ne, %51, %c0_i32_25 : i32
    scf.if %52 {
      %c0_26 = arith.constant 0 : index
      %c0_27 = arith.constant 0 : index
      %53 = vector.load %arg9[%c0_26, %c0_27] : memref<8x128xf32, #tpu.memory_space<vmem>>, vector<8x128xf32>
      tpu.vector_store %arg9[%c0_26, %c0_27], %42 {strides = array<i32>} : memref<8x128xf32, #tpu.memory_space<vmem>>, vector<8x128xf32>,
    } else {
    }
    return
  }
  func.func @transform_0(%arg0: i32) -> (i32, i32, i32) {
    %c0_i32 = arith.constant 0 : i32
    %c0_i32_0 = arith.constant 0 : i32
    %c0_i32_1 = arith.constant 0 : i32
    return %arg0, %c0_i32, %c0_i32_0 : i32, i32, i32
  }
  func.func @transform_1(%arg0: i32) -> (i32, i32) {
    %c0_i32 = arith.constant 0 : i32
    %c0_i32_0 = arith.constant 0 : i32
    %c0_i32_1 = arith.constant 0 : i32
    return %c0_i32, %c0_i32_0 : i32, i32
  }
  func.func @transform_2(%arg0: i32) -> (i32, i32) {
    %c0_i32 = arith.constant 0 : i32
    %c0_i32_0 = arith.constant 0 : i32
    %c0_i32_1 = arith.constant 0 : i32
    return %c0_i32, %c0_i32_0 : i32, i32
  }
  func.func @transform_3(%arg0: i32) -> (i32, i32) {
    %c0_i32 = arith.constant 0 : i32
    %c0_i32_0 = arith.constant 0 : i32
    %c0_i32_1 = arith.constant 0 : i32
    return %c0_i32, %c0_i32_0 : i32, i32
  }
  func.func @transform_4(%arg0: i32) -> (i32, i32) {
    %c0_i32 = arith.constant 0 : i32
    %c0_i32_0 = arith.constant 0 : i32
    %c0_i32_1 = arith.constant 0 : i32
    return %c0_i32, %c0_i32_0 : i32, i32
  }
  func.func @transform_5(%arg0: i32) -> (i32, i32) {
    %c0_i32 = arith.constant 0 : i32
    %c0_i32_0 = arith.constant 0 : i32
    %c0_i32_1 = arith.constant 0 : i32
    return %c0_i32, %c0_i32_0 : i32, i32
  }
  func.func @transform_6(%arg0: i32) -> (i32, i32) {
    %c0_i32 = arith.constant 0 : i32
    %c0_i32_0 = arith.constant 0 : i32
    %c0_i32_1 = arith.constant 0 : i32
    return %c0_i32, %c0_i32_0 : i32, i32
  }
  func.func @transform_7(%arg0: i32) -> (i32, i32, i32) {
    %c0_i32 = arith.constant 0 : i32
    %c0_i32_0 = arith.constant 0 : i32
    %c0_i32_1 = arith.constant 0 : i32
    return %arg0, %c0_i32, %c0_i32_0 : i32, i32, i32
  }
  func.func @transform_8(%arg0: i32) -> (i32, i32) {
    %c0_i32 = arith.constant 0 : i32
    %c0_i32_0 = arith.constant 0 : i32
    %c0_i32_1 = arith.constant 0 : i32
    return %c0_i32, %c0_i32_0 : i32, i32
  }
}

</mosaic_0001>

<bundles_post_ra>
// kernel: tpu_custom_call.1
= control target key start
LH: loop header
LB: loop body
LE: loop exit
PB: predicated region body
PF: predicated region fallthrough
CT: control target
= control target key end

     0   :  { %s2103_s0 = inlined_call_operand.hbm [shape: f32[8,8,128], index: 0, kind: input, shape index: {}]   ;;  %s2104_s1 = inlined_call_operand.hbm [shape: f32[8,128], index: 1, kind: input, shape index: {}]   ;;  %s2105_s2 = inlined_call_operand.hbm [shape: f32[128,512], index: 2, kind: input, shape index: {}]   ;;  %s2106_s3 = inlined_call_operand.vmem [shape: f32[1,512], index: 3, kind: input, shape index: {}]   ;;  %s2107_s4 = inlined_call_operand.hbm [shape: f32[128,384], index: 4, kind: input, shape index: {}]   ;;  %s2108_s5 = inlined_call_operand.vmem [shape: f32[1,128], index: 5, kind: input, shape index: {}]   ;;  %s2109_s6 = inlined_call_operand.hbm [shape: f32[128,128], index: 6, kind: input, shape index: {}]   ;;  %s2110_s7 = inlined_call_operand.hbm [shape: f32[8,8,128], index: 7, kind: output, shape index: {0}]   ;;  %s2111_s8 = inlined_call_operand.hbm [shape: f32[8,128], index: 8, kind: output, shape index: {1}]  }
   0x1   :  { %2116 = sst [smem:[#allocation20_spill]] %s2104_s1 }
   0x2   :  { %14 = vsyncpa [#allocation4], 0 }
   0x3   :  { %16 = vsyncpa [#allocation4 + $0x1], 0 }
   0x4   :  { %17 = vsyncpa [#allocation7], 0 }
   0x5   :  { %18 = vsyncpa [#allocation10], 0 }
   0x6   :  { %19 = vsyncpa [#allocation5], 0 }
   0x7   :  { %21 = vsyncpa [#allocation5 + $0x1], 0 }
   0x8   :  { %22 = vsyncpa [#allocation14], 0  ;;  %s1769_s27 = smov 0   ;;  %s1771_s28 = smov 0  }
   0x9   :  { %s1773_s29 = smov 0   ;;  %s1775_s30 = smov 0  }
   0xa LB: > { %s1708_s9 = smov [#allocation6]   ;;  %s1790_s11 = sadd.s32 4294967295, %s1706_s30   ;;  %s1706_s30 = sphi %s1775_s30, %s2142_s30   ;;  %s1702_s29 = sphi %s1773_s29, %s2141_s29   ;;  %s1698_s28 = sphi %s1771_s28, %s2140_s28   ;;  %s1694_s27 = sphi %s1769_s27, %s2139_s27  }
   0xb   : > { %s245_s10 = sshll.u32 %s1708_s9, 4  ;;  %p1069_p0 = scmp.ge.s32.totalorder %s1706_s30, 1  ;;  %s246_s10 = int_to_ptr.vmem [resolvable:$true] %s245_s10 }
   0xc   : > { %p2112_p1 = scmp.eq.s32.totalorder %s1790_s11, 0  ;;  %p232_p2 = scmp.lt.s32.totalorder %s1706_s30, 9 }
   0xd   : > { %s1709_s13 = smov [#allocation9]   ;;  %s1710_s16 = smov [#allocation8]  }
   0xe   : > { %p1796_p4 = pnand %p1069_p0, %p232_p2  ;;  %s271_s14 = sshll.u32 %s1709_s13, 4  ;;  %s1802_s14 = int_to_ptr.vmem [resolvable:$true] %s271_s14 }
   0xf   : > { %s255_s17 = sshll.u32 %s1710_s16, 4  ;;  %s2119_s1 = sld [smem:[#allocation20_spill]]  ;;  %s1810_s17 = int_to_ptr.vmem [resolvable:$true] %s255_s17 }
  0x10   : > { %s2117_s12 = scalar_select %p1796_p4, 1, 0 }
  0x11   : > { %p1371_p5 = pneg %p1796_p4 }
  0x13   : > { %p1806_p6 = pnand %p1371_p5, %p2112_p1 }
  0x15   : > { %s1460_s20 = scalar_lea.hbm %s2119_s1, 128  ;;  %p1820_p8 = pneg %p1806_p6 }
  0x16   : > { %p1461_p7 = scmp.ne.s32.totalorder %s2119_s1, %s1460_s20  ;;  %p1467_p11 = scmp.lt.u32.totalorder %s1460_s20, %s2119_s1 }
  0x18   : > { %p1463_p9 = pnand %p1820_p8, %p1461_p7 }
  0x1a   : > { %p1464_p10 = pneg %p1463_p9 }
  0x1c   : > { %p1469_p12 = pnand %p1467_p11, %p1464_p10 }
  0x1e   : > { %1472 = shalt.err (!%p1469_p12)
}
  0x1f   : > { %s1473_s26 = scalar_lea.vmem %s246_s10, 128  ;;  %p1481_p5 = scmp.lt.s32.totalorder %s246_s10, %s246_s10 }
  0x20   : > { %p1474_p13 = scmp.ne.s32.totalorder %s246_s10, %s1473_s26  ;;  %p1482_p3 = scmp.lt.s32.totalorder %s1473_s26, %s1473_s26 }
  0x22   : > { %p1476_p0 = pnand %p1474_p13, %p1820_p8  ;;  %p1483_p1 = por %p1482_p3, %p1481_p5 }
  0x24   : > { %p1477_p2 = pneg %p1476_p0 }
  0x26   : > { %p1484_p4 = pnand %p1483_p1, %p1477_p2 }
  0x28   : > { %1487 = shalt.err (!%p1484_p4)
}
  0x29   : > { %1374 = dma.hbm_to_vmem [thread:$0]  (!%p1806_p6), %s2119_s1, 128, %s246_s10, [#allocation7]  }
  0x2a   : > { %s1488_s19 = scalar_lea.hbm %s2107_s4, 6144 }
  0x2b   : > { %p1489_p7 = scmp.ne.s32.totalorder %s2107_s4, %s1488_s19  ;;  %p1495_p1 = scmp.lt.u32.totalorder %s1488_s19, %s2107_s4 }
  0x2d   : > { %p1491_p9 = pnand %p1489_p7, %p1820_p8 }
  0x2f   : > { %p1492_p3 = pneg %p1491_p9 }
  0x31   : > { %p1497_p4 = pnand %p1495_p1, %p1492_p3 }
  0x33   : > { %1500 = shalt.err (!%p1497_p4)
}
  0x34   : > { %s1501_s10 = scalar_lea.vmem %s1802_s14, 6144  ;;  %p1509_p13 = scmp.lt.s32.totalorder %s1802_s14, %s1802_s14 }
  0x35   : > { %p1502_p10 = scmp.ne.s32.totalorder %s1802_s14, %s1501_s10  ;;  %p1510_p0 = scmp.lt.s32.totalorder %s1501_s10, %s1501_s10 }
  0x37   : > { %p1504_p11 = pnand %p1502_p10, %p1820_p8  ;;  %p1511_p2 = por %p1510_p0, %p1509_p13 }
  0x39   : > { %p1505_p12 = pneg %p1504_p11 }
  0x3b   : > { %p1512_p5 = pnand %p1511_p2, %p1505_p12 }
  0x3d   : > { %1515 = shalt.err (!%p1512_p5)
}
  0x3e   : > { %s1711_s25 = smov 384   ;;  %s1712_s26 = smov 24  }
  0x3f   : > { %1380 = dma.hbm_to_vmem [thread:$0]  (!%p1806_p6), %s2107_s4, 6144, %s1802_s14, [#allocation10], %s1711_s25, %s1711_s25, %s1712_s26  }
  0x40   : > { %s1516_s19 = scalar_lea.hbm %s2105_s2, 8192 }
  0x41   : > { %p1517_p7 = scmp.ne.s32.totalorder %s2105_s2, %s1516_s19  ;;  %p1523_p1 = scmp.lt.u32.totalorder %s1516_s19, %s2105_s2 }
  0x43   : > { %p1519_p9 = pnand %p1517_p7, %p1820_p8 }
  0x45   : > { %p1520_p3 = pneg %p1519_p9 }
  0x47   : > { %p1525_p4 = pnand %p1523_p1, %p1520_p3 }
  0x49   : > { %1528 = shalt.err (!%p1525_p4)
}
  0x4a   : > { %s1529_s14 = scalar_lea.vmem %s1810_s17, 8192  ;;  %p1537_p13 = scmp.lt.s32.totalorder %s1810_s17, %s1810_s17 }
  0x4b   : > { %p1530_p10 = scmp.ne.s32.totalorder %s1810_s17, %s1529_s14  ;;  %p1538_p0 = scmp.lt.s32.totalorder %s1529_s14, %s1529_s14 }
  0x4d   : > { %p1532_p11 = pnand %p1530_p10, %p1820_p8  ;;  %p1539_p2 = por %p1538_p0, %p1537_p13 }
  0x4f   : > { %p1533_p12 = pneg %p1532_p11 }
  0x51   : > { %p1540_p5 = pnand %p1539_p2, %p1533_p12 }
  0x53   : > { %1543 = shalt.err (!%p1540_p5)
}
  0x54   : > { %s1713_s10 = smov 512   ;;  %s1714_s25 = smov 32  }
  0x55   : > { %1377 = dma.hbm_to_vmem [thread:$0]  (!%p1806_p6), %s2105_s2, 8192, %s1810_s17, [#allocation7], %s1713_s10, %s1713_s10, %s1714_s25  }
  0x56   : > { %s1715_s13 = smov [#allocation11]   ;;  %s1544_s20 = scalar_lea.hbm %s2109_s6, 2048 }
  0x57   : > { %s287_s16 = sshll.u32 %s1715_s13, 4  ;;  %p1545_p7 = scmp.ne.s32.totalorder %s2109_s6, %s1544_s20  ;;  %s288_s16 = int_to_ptr.vmem [resolvable:$true] %s287_s16 }
  0x58   : > { %p1551_p1 = scmp.lt.u32.totalorder %s1544_s20, %s2109_s6 }
  0x59   : > { %p1547_p9 = pnand %p1545_p7, %p1820_p8 }
  0x5b   : > { %p1548_p3 = pneg %p1547_p9 }
  0x5d   : > { %p1553_p4 = pnand %p1551_p1, %p1548_p3 }
  0x5f   : > { %1556 = shalt.err (!%p1553_p4)
}
  0x60   : > { %s1557_s17 = scalar_lea.vmem %s288_s16, 2048  ;;  %p1565_p13 = scmp.lt.s32.totalorder %s288_s16, %s288_s16 }
  0x61   : > { %p1558_p10 = scmp.ne.s32.totalorder %s288_s16, %s1557_s17  ;;  %p1566_p0 = scmp.lt.s32.totalorder %s1557_s17, %s1557_s17 }
  0x63   : > { %p1560_p11 = pnand %p1558_p10, %p1820_p8  ;;  %p1567_p2 = por %p1566_p0, %p1565_p13 }
  0x65   : > { %p1561_p12 = pneg %p1560_p11 }
  0x67   : > { %p1568_p5 = pnand %p1567_p2, %p1561_p12 }
  0x69   : > { %1571 = shalt.err (!%p1568_p5)
}
  0x6a   : > { %s1716_s10 = smov 128   ;;  %s1717_s23 = smov 8  }
  0x6b   : > { %1383 = dma.hbm_to_vmem [thread:$0]  (!%p1806_p6), %s2109_s6, 2048, %s288_s16, [#allocation10], %s1716_s10, %s1716_s10, %s1717_s23  }
  0x6c   : > { %s1068_s9 = sadd.s32 4294967294, %s1706_s30   ;;  %s1902_s13 = sadd.s32 1, %s1706_s30  }
  0x6d   : > { %s32_s18 = ssub.s32 %s1706_s30, %s1902_s13  ;;  %s35_s19 = sadd.s32 1, %s1702_s29 }
  0x6e   : > { %p33_p8 = scmp.eq.s32.totalorder %s32_s18, 0  ;;  %p42_p7 = scmp.ne.s32.totalorder %s1702_s29, %s1698_s28 }
  0x6f   : > { %p43_p9 = scmp.eq.s32.totalorder %s1706_s30, 0  ;;  %p48_p3 = scmp.ne.s32.totalorder %s1698_s28, %s1694_s27 }
  0x70   : > { %s1913_s20 = scalar_select %p33_p8, %s1702_s29, %s35_s19  }
  0x71   : > { %p1915_p1 = por %p43_p9, %p42_p7  ;;  %p2122_p4 = scmp.eq.s32.totalorder %s1790_s11, 0 }
  0x72   : > { %p2114_p10 = scmp.eq.s32.totalorder %s1790_s11, 7  ;;  %p204_p11 = scmp.eq.s32.totalorder %s1068_s9, 7 }
  0x73   : > { %p1921_p6 = por %p2122_p4, %p48_p3  ;;  %p1396_p12 = scmp.lt.s32.totalorder %s1706_s30, 8 }
  0x74   : > { %s301_s21 = sand.u32 1, %s1702_s29   ;;  %p1930_p13 = por %p2114_p10, %p42_p7 }
  0x75   : > { %p1934_p0 = por %p204_p11, %p48_p3  ;;  %s1075_s14 = sshll.u32 %s301_s21, 3 }
  0x76   : > { %s2124_s22 = scalar_select %p1930_p13, 1, 0 }
  0x77   : > { %s2125_s24 = scalar_select %p1934_p0, 1, 0 }
  0x78   : > { %s1076_s17 = sshll.u32 %s1706_s30, 7  ;;  %s305_s26 = scalar_lea.vmem [#allocation3], %s1075_s14 }
  0x79   : > { %s1942_s25 = scalar_lea.hbm %s2103_s0, %s1076_s17  ;;  %s312_s9 = sshll.u32 %s305_s26, 4  ;;  %s1944_s9 = int_to_ptr.vmem [resolvable:$true] %s312_s9 }
  0x7a   : > { %p1948_p2 = pnand %p1396_p12, %p1915_p1  ;;  %s302_s19 = scalar_lea.sflag [#allocation4], %s301_s21 }
  0x7b   : > { %s1572_s1 = scalar_lea.hbm %s1942_s25, 128  ;;  %s1577_s10 = scalar_lea.hbm %s2103_s0, 1024 }
  0x7c   : > { %p1573_p5 = scmp.ne.s32.totalorder %s1942_s25, %s1572_s1  ;;  %p1574_p8 = pneg %p1948_p2 }
  0x7d   : > { %p1578_p3 = scmp.lt.u32.totalorder %s1942_s25, %s2103_s0  ;;  %p1579_p1 = scmp.lt.u32.totalorder %s1577_s10, %s1572_s1 }
  0x7e   : > { %p1575_p7 = pnand %p1574_p8, %p1573_p5  ;;  %p1581_p11 = scmp.lt.u32.totalorder %s1572_s1, %s1942_s25 }
  0x7f   : > { %p1580_p4 = por %p1579_p1, %p1578_p3 }
  0x80   : > { %p1576_p9 = pneg %p1575_p7 }
  0x81   : > { %p1582_p12 = por %p1581_p11, %p1580_p4 }
  0x83   : > { %p1583_p10 = pnand %p1582_p12, %p1576_p9 }
  0x85   : > { %1586 = shalt.err (!%p1583_p10)
}
  0x86   : > { %s1587_s21 = scalar_lea.vmem %s1944_s9, 128  ;;  %s1718_s26 = smov [#allocation3]  }
  0x87   : > { %p1588_p5 = scmp.ne.s32.totalorder %s1944_s9, %s1587_s21  ;;  %s1592_s14 = sshll.u32 %s1718_s26, 4  ;;  %s1593_s14 = int_to_ptr.vmem [resolvable:$false] %s1592_s14 }
  0x88   : > { %s1594_s17 = scalar_lea.vmem %s1593_s14, 256  ;;  %p1595_p13 = scmp.lt.s32.totalorder %s1944_s9, %s1593_s14 }
  0x89   : > { %p1590_p7 = pnand %p1588_p5, %p1574_p8  ;;  %p1596_p3 = scmp.lt.s32.totalorder %s1594_s17, %s1587_s21 }
  0x8b   : > { %p1591_p0 = pneg %p1590_p7  ;;  %p1597_p1 = por %p1596_p3, %p1595_p13 }
  0x8d   : > { %p1598_p4 = pnand %p1597_p1, %p1591_p0 }
  0x8f   : > { %1601 = shalt.err (!%p1598_p4)
}
  0x90   : > { %1387 = dma.hbm_to_vmem [thread:$0]  (!%p1948_p2), %s1942_s25, 128, %s1944_s9, %s302_s19  }
  0x91   : > { %p2127_p10 = scmp.ne.s32.totalorder %s2117_s12, 0 }
  0x92   : > { %s1980_s1 = sand.u32 (!%p2127_p10), 1, %s1698_s28  }
  0x93   : > { %321 = sbr.rel (%p2127_p10) target bundleno = 766 (0x2fe), region = 48  ;;  %s1078_s10 = sshll.u32 (!%p2127_p10), %s1980_s1, 3 }
  0x94   : > { %s324_s15 = scalar_lea.sflag (!%p2127_p10), [#allocation4], %s1980_s1  ;;  %s1984_s23 = scalar_lea.vmem (!%p2127_p10), [#allocation3], %s1078_s10 }
  0x9a   : > { %1673 = dma.done.wait (%p1921_p6), %s324_s15, 128  }
  0x9b   : > { %1675 = vsyncadd (%p1921_p6), %s324_s15, 4294967168  ;;  %p2128_p13 = scmp.eq.s32.totalorder %s1790_s11, 0 }
  0x9d   : > { %1677 = dma.done.wait (%p2128_p13), [#allocation7], 8320   ;;  %p2129_p0 = pmov %p2128_p13 }
  0x9f   : > { %1679 = vsyncadd (%p2129_p0), [#allocation7], 4294958976  ;;  %p2130_p2 = pmov %p2129_p0 }
  0xa0   : > { %p2131_p8 = pmov %p2129_p0 }
  0xa1   : > { %1681 = dma.done.wait (%p2130_p2), [#allocation10], 8192  }
  0xa2   : > { %1683 = vsyncadd (%p2131_p8), [#allocation10], 4294959104  ;;  %s1998_s12 = scalar_lea.vmem [#allocation12], %s1078_s10  ;;  %p2132_p9 = scmp.ne.s32.totalorder %s1790_s11, 0 }
  0xa3   : > { %v380_v0 = vld [vmem:[#allocation6] sm:$0xff] (!%p2132_p9) }
  0xa4   : > { %379 = sbr.rel (%p2132_p9) target bundleno = 171 (0xab), region = 72  ;;  %381 = vst [vmem:[#allocation2] sm:$0xff] (!%p2132_p9), %v380_v0 }
  0xab PF: > { %v385_v1 = vld [vmem:[#allocation8 + $0x8] sm:$0xff]  ;;  %v384_v3 = vld [vmem:[#allocation8] sm:$0xff]  ;;  %v1719_v8 = vmov 0.0   ;;  %v387_v26 = vld [vmem:[#allocation8 + $0x18] sm:$0xff]  ;;  %vm1721_vm0 = vmmov 0   ;;  %p1088_p6 = scmp.ne.s32.totalorder %s1790_s11, 7 }
  0xac   : > { %v389_v2 = vld [vmem:[#allocation8 + $0x28] sm:$0xff]  ;;  %v388_v5 = vld [vmem:[#allocation8 + $0x20] sm:$0xff]  ;;  %534 = vmatprep.mubr.f32.mxu0 %v1719_v8  ;;  %605 = vmatprep.mubr.f32.mxu1 %v1719_v8  ;;  %v391_v27 = vld [vmem:[#allocation8 + $0x38] sm:$0xff] }
  0xad   : > { %v1199_v4 = vpack.c.bf16 %v389_v2, %v385_v1  ;;  %v393_v6 = vld [vmem:[#allocation8 + $0x48] sm:$0xff]  ;;  %v1201_v9 = vpack.c.bf16 %v388_v5, %v384_v3  ;;  %v392_v11 = vld [vmem:[#allocation8 + $0x40] sm:$0xff]  ;;  %v1231_v29 = vpack.c.bf16 %v391_v27, %v387_v26  ;;  %v386_v30 = vld [vmem:[#allocation8 + $0x10] sm:$0xff] }
  0xae   : > { %v397_v7 = vld [vmem:[#allocation8 + $0x68] sm:$0xff]  ;;  %v396_v12 = vld [vmem:[#allocation8 + $0x60] sm:$0xff]  ;;  %v390_v31 = vld [vmem:[#allocation8 + $0x30] sm:$0xff] }
  0xaf   : > { %v1203_v10 = vpack.c.bf16 %v397_v7, %v393_v6  ;;  %v401_v13 = vld [vmem:[#allocation8 + $0x88] sm:$0xff]  ;;  %1200 = vmatprep.subr.bf16.mxu0 %v1199_v4  ;;  %v1205_v15 = vpack.c.bf16 %v396_v12, %v392_v11  ;;  %v400_v17 = vld [vmem:[#allocation8 + $0x80] sm:$0xff]  ;;  %v1233_v33 = vpack.c.bf16 %v390_v31, %v386_v30  ;;  %1232 = vmatprep.subr.bf16.mxu1 %v1231_v29  ;;  %v395_v35 = vld [vmem:[#allocation8 + $0x58] sm:$0xff] }
  0xb0   : > { %v405_v14 = vld [vmem:[#allocation8 + $0xa8] sm:$0xff]  ;;  %1202 = vmatpush1.bf16.msra.mxu0 %v1201_v9  ;;  %v404_v18 = vld [vmem:[#allocation8 + $0xa0] sm:$0xff]  ;;  %v399_v36 = vld [vmem:[#allocation8 + $0x78] sm:$0xff] }
  0xb1   : > { %1204 = vmatprep.subr.bf16.mxu0 %v1203_v10  ;;  %v1207_v16 = vpack.c.bf16 %v405_v14, %v401_v13  ;;  %v409_v19 = vld [vmem:[#allocation8 + $0xc8] sm:$0xff]  ;;  %v1209_v21 = vpack.c.bf16 %v404_v18, %v400_v17  ;;  %v408_v22 = vld [vmem:[#allocation8 + $0xc0] sm:$0xff]  ;;  %v394_v37 = vld [vmem:[#allocation8 + $0x50] sm:$0xff]  ;;  %1234 = vmatpush1.bf16.msra.mxu1 %v1233_v33  ;;  %v1235_v41 = vpack.c.bf16 %v399_v36, %v395_v35 }
  0xb2   : > { %v413_v20 = vld [vmem:[#allocation8 + $0xe8] sm:$0xff]  ;;  %v412_v23 = vld [vmem:[#allocation8 + $0xe0] sm:$0xff]  ;;  %v398_v42 = vld [vmem:[#allocation8 + $0x70] sm:$0xff] }
  0xb3   : > { %v1211_v24 = vpack.c.bf16 %v413_v20, %v409_v19  ;;  %v417_v25 = vld [vmem:[#allocation8 + $0x108] sm:$0xff]  ;;  %v416_v32 = vld [vmem:[#allocation8 + $0x100] sm:$0xff]  ;;  %v1213_v34 = vpack.c.bf16 %v412_v23, %v408_v22  ;;  %v1237_v44 = vpack.c.bf16 %v398_v42, %v394_v37  ;;  %v403_v45 = vld [vmem:[#allocation8 + $0x98] sm:$0xff]  ;;  %1236 = vmatprep.subr.bf16.mxu1 %v1235_v41 }
  0xb4   : > { %1206 = vmatpush1.bf16.msra.mxu0 %v1205_v15  ;;  %v421_v28 = vld [vmem:[#allocation8 + $0x128] sm:$0xff]  ;;  %v420_v39 = vld [vmem:[#allocation8 + $0x120] sm:$0xff]  ;;  %v407_v46 = vld [vmem:[#allocation8 + $0xb8] sm:$0xff] }
  0xb5   : > { %1208 = vmatprep.subr.bf16.mxu0 %v1207_v16  ;;  %v1215_v38 = vpack.c.bf16 %v421_v28, %v417_v25  ;;  %v425_v40 = vld [vmem:[#allocation8 + $0x148] sm:$0xff]  ;;  %v1239_v47 = vpack.c.bf16 %v407_v46, %v403_v45  ;;  %v402_v48 = vld [vmem:[#allocation8 + $0x90] sm:$0xff]  ;;  %v1217_v49 = vpack.c.bf16 %v420_v39, %v416_v32  ;;  %v424_v50 = vld [vmem:[#allocation8 + $0x140] sm:$0xff]  ;;  %1238 = vmatpush1.bf16.msra.mxu1 %v1237_v44 }
  0xb6   : > { %v429_v43 = vld [vmem:[#allocation8 + $0x168] sm:$0xff]  ;;  %v428_v51 = vld [vmem:[#allocation8 + $0x160] sm:$0xff]  ;;  %v406_v52 = vld [vmem:[#allocation8 + $0xb0] sm:$0xff] }
  0xb7   : > { %v1219_v53 = vpack.c.bf16 %v429_v43, %v425_v40  ;;  %v433_v54 = vld [vmem:[#allocation8 + $0x188] sm:$0xff]  ;;  %v1241_v55 = vpack.c.bf16 %v406_v52, %v402_v48  ;;  %v411_v56 = vld [vmem:[#allocation8 + $0xd8] sm:$0xff]  ;;  %1240 = vmatprep.subr.bf16.mxu1 %v1239_v47  ;;  %v410_v60 = vld [vmem:[#allocation8 + $0xd0] sm:$0xff]  ;;  %v1221_v63 = vpack.c.bf16 %v428_v51, %v424_v50 }
  0xb8   : > { %1210 = vmatpush1.bf16.msra.mxu0 %v1209_v21  ;;  %v415_v57 = vld [vmem:[#allocation8 + $0xf8] sm:$0xff]  ;;  %v437_v58 = vld [vmem:[#allocation8 + $0x1a8] sm:$0xff]  ;;  %v414_v61 = vld [vmem:[#allocation8 + $0xf0] sm:$0xff] }
  0xb9   : > { %1212 = vmatprep.subr.bf16.mxu0 %v1211_v24  ;;  %v1243_v59 = vpack.c.bf16 %v415_v57, %v411_v56  ;;  %v419_v62 = vld [vmem:[#allocation8 + $0x118] sm:$0xff]  ;;  %v1223_v1 = vpack.c.bf16 %v437_v58, %v433_v54  ;;  %v432_v2 = vld [vmem:[#allocation8 + $0x180] sm:$0xff]  ;;  %v441_v4 = vld [vmem:[#allocation8 + $0x1c8] sm:$0xff]  ;;  %1242 = vmatpush1.bf16.msra.mxu1 %v1241_v55  ;;  %v1245_v5 = vpack.c.bf16 %v414_v61, %v410_v60 }
  0xba   : > { %v423_v0 = vld [vmem:[#allocation8 + $0x138] sm:$0xff]  ;;  %v436_v3 = vld [vmem:[#allocation8 + $0x1a0] sm:$0xff]  ;;  %v445_v6 = vld [vmem:[#allocation8 + $0x1e8] sm:$0xff] }
  0xbb   : > { %1244 = vmatprep.subr.bf16.mxu1 %v1243_v59  ;;  %v1247_v7 = vpack.c.bf16 %v423_v0, %v419_v62  ;;  %v418_v9 = vld [vmem:[#allocation8 + $0x110] sm:$0xff]  ;;  %v427_v11 = vld [vmem:[#allocation8 + $0x158] sm:$0xff]  ;;  %v1225_v13 = vpack.c.bf16 %v436_v3, %v432_v2  ;;  %v1227_v14 = vpack.c.bf16 %v445_v6, %v441_v4  ;;  %v440_v15 = vld [vmem:[#allocation8 + $0x1c0] sm:$0xff]  ;;  %v1720_v0 = vmov 0.0|0.0  }
  0xbc   : > { %1214 = vmatpush1.bf16.msra.mxu0 %v1213_v34  ;;  %v422_v10 = vld [vmem:[#allocation8 + $0x130] sm:$0xff]  ;;  %v431_v12 = vld [vmem:[#allocation8 + $0x178] sm:$0xff]  ;;  %v444_v16 = vld [vmem:[#allocation8 + $0x1e0] sm:$0xff] }
  0xbd   : > { %1216 = vmatprep.subr.bf16.mxu0 %v1215_v38  ;;  %v613_v17 = vld [vmem:[#allocation9 + $0x8] sm:$0xff]  ;;  %1246 = vmatpush1.bf16.msra.mxu1 %v1245_v5  ;;  %v1249_v18 = vpack.c.bf16 %v422_v10, %v418_v9  ;;  %v616_v19 = vld [vmem:[#allocation9 + $0x20] sm:$0xff]  ;;  %v1251_v20 = vpack.c.bf16 %v431_v12, %v427_v11  ;;  %v426_v21 = vld [vmem:[#allocation8 + $0x150] sm:$0xff]  ;;  %v1229_v25 = vpack.c.bf16 %v444_v16, %v440_v15 }
  0xbe   : > { %1248 = vmatprep.subr.bf16.mxu1 %v1247_v7  ;;  %v430_v22 = vld [vmem:[#allocation8 + $0x170] sm:$0xff]  ;;  %v435_v23 = vld [vmem:[#allocation8 + $0x198] sm:$0xff]  ;;  %v1263_v26 = vpack.c.bf16 %v616_v19, %v613_v17  ;;  %v612_v27 = vld [vmem:[#allocation9] sm:$0xff] }
  0xbf   : > { %v439_v24 = vld [vmem:[#allocation8 + $0x1b8] sm:$0xff]  ;;  %v1253_v30 = vpack.c.bf16 %v430_v22, %v426_v21  ;;  %v622_v31 = vld [vmem:[#allocation9 + $0x50] sm:$0xff]  ;;  %v621_v41 = vld [vmem:[#allocation9 + $0x48] sm:$0xff] }
  0xc0   : > { %1218 = vmatpush1.bf16.msra.mxu0 %v1217_v49  ;;  %v615_v28 = vld [vmem:[#allocation9 + $0x18] sm:$0xff]  ;;  %v1255_v32 = vpack.c.bf16 %v439_v24, %v435_v23  ;;  %v434_v33 = vld [vmem:[#allocation8 + $0x190] sm:$0xff]  ;;  %v625_v42 = vld [vmem:[#allocation9 + $0x68] sm:$0xff] }
  0xc1   : > { %1220 = vmatprep.subr.bf16.mxu0 %v1219_v53  ;;  %v619_v29 = vld [vmem:[#allocation9 + $0x38] sm:$0xff]  ;;  %1250 = vmatpush1.bf16.msra.mxu1 %v1249_v18  ;;  %v438_v34 = vld [vmem:[#allocation8 + $0x1b0] sm:$0xff]  ;;  %v1265_v38 = vpack.c.bf16 %v615_v28, %v612_v27  ;;  %v628_v44 = vld [vmem:[#allocation9 + $0x80] sm:$0xff] }
  0xc2   : > { %1252 = vmatprep.subr.bf16.mxu1 %v1251_v20  ;;  %v443_v35 = vld [vmem:[#allocation8 + $0x1d8] sm:$0xff]  ;;  %v382_v37 = vld [vmem:[%s1984_s23] sm:$0xff]  ;;  %v1267_v39 = vpack.c.bf16 %v622_v31, %v619_v29  ;;  %v1257_v43 = vpack.c.bf16 %v438_v34, %v434_v33  ;;  %v1271_v49 = vpack.c.bf16 %v628_v44, %v625_v42  ;;  %v624_v50 = vld [vmem:[#allocation9 + $0x60] sm:$0xff] }
  0xc3   : > { %v447_v36 = vld [vmem:[#allocation8 + $0x1f8] sm:$0xff]  ;;  %v618_v40 = vld [vmem:[#allocation9 + $0x30] sm:$0xff]  ;;  %v617_v56 = vld [vmem:[#allocation9 + $0x28] sm:$0xff] }
  0xc4   : > { %1222 = vmatpush1.bf16.msra.mxu0 %v1221_v63  ;;  %v1259_v45 = vpack.c.bf16 %v447_v36, %v443_v35  ;;  %v442_v46 = vld [vmem:[#allocation8 + $0x1d0] sm:$0xff]  ;;  %v1269_v48 = vpack.c.bf16 %v621_v41, %v618_v40  ;;  %v627_v51 = vld [vmem:[#allocation9 + $0x78] sm:$0xff]  ;;  %v633_v60 = vld [vmem:[#allocation9 + $0xa8] sm:$0xff] }
  0xc5   : > { %1224 = vmatprep.subr.bf16.mxu0 %v1223_v1  ;;  %1254 = vmatpush1.bf16.msra.mxu1 %v1253_v30  ;;  %v446_v47 = vld [vmem:[#allocation8 + $0x1f0] sm:$0xff]  ;;  %v631_v52 = vld [vmem:[#allocation9 + $0x98] sm:$0xff]  ;;  %v1273_v57 = vpack.c.bf16 %v627_v51, %v624_v50  ;;  %v637_v61 = vld [vmem:[#allocation9 + $0xc8] sm:$0xff] }
  0xc6   : > { %1256 = vmatprep.subr.bf16.mxu1 %v1255_v32  ;;  %v1261_v53 = vpack.c.bf16 %v446_v47, %v442_v46  ;;  %v634_v54 = vld [vmem:[#allocation9 + $0xb0] sm:$0xff]  ;;  %v640_v63 = vld [vmem:[#allocation9 + $0xe0] sm:$0xff]  ;;  %v623_v2 = vld [vmem:[#allocation9 + $0x58] sm:$0xff] }
  0xc7   : > { %v614_v55 = vld [vmem:[#allocation9 + $0x10] sm:$0xff]  ;;  %v1275_v58 = vpack.c.bf16 %v634_v54, %v631_v52  ;;  %v620_v1 = vld [vmem:[#allocation9 + $0x40] sm:$0xff]  ;;  %v1279_v4 = vpack.c.bf16 %v640_v63, %v637_v61  ;;  %v639_v6 = vld [vmem:[#allocation9 + $0xd8] sm:$0xff] }
  0xc8   : > { %1226 = vmatpush1.bf16.msra.mxu0 %v1225_v13  ;;  %v630_v59 = vld [vmem:[#allocation9 + $0x90] sm:$0xff]  ;;  %v1296_v62 = vpack.c.bf16 %v617_v56, %v614_v55  ;;  %v636_v5 = vld [vmem:[#allocation9 + $0xc0] sm:$0xff]  ;;  %v643_v7 = vld [vmem:[#allocation9 + $0xf8] sm:$0xff]  ;;  %v1299_v9 = vpack.c.bf16 %v623_v2, %v620_v1 }
  0xc9   : > { %1228 = vmatprep.subr.bf16.mxu0 %v1227_v14  ;;  %1258 = vmatpush1.bf16.msra.mxu1 %v1257_v43  ;;  %v1277_v3 = vpack.c.bf16 %v633_v60, %v630_v59  ;;  %v646_v10 = vld [vmem:[#allocation9 + $0x110] sm:$0xff]  ;;  %v629_v12 = vld [vmem:[#allocation9 + $0x88] sm:$0xff]  ;;  %v1281_v13 = vpack.c.bf16 %v639_v6, %v636_v5  ;;  %v652_v19 = vld [vmem:[#allocation9 + $0x140] sm:$0xff] }
  0xca   : > { %1260 = vmatprep.subr.bf16.mxu1 %v1259_v45  ;;  %v626_v11 = vld [vmem:[#allocation9 + $0x70] sm:$0xff]  ;;  %v1283_v14 = vpack.c.bf16 %v646_v10, %v643_v7  ;;  %v645_v16 = vld [vmem:[#allocation9 + $0x108] sm:$0xff]  ;;  %v632_v20 = vld [vmem:[#allocation9 + $0xa0] sm:$0xff]  ;;  %v450_v10 = vlaneseq }
  0xcb   : > { %v642_v15 = vld [vmem:[#allocation9 + $0xf0] sm:$0xff]  ;;  %v649_v17 = vld [vmem:[#allocation9 + $0x128] sm:$0xff]  ;;  %v1302_v18 = vpack.c.bf16 %v629_v12, %v626_v11  ;;  %v635_v21 = vld [vmem:[#allocation9 + $0xb8] sm:$0xff] }
  0xcc   : > { %1230 = vmatpush1.bf16.msra.mxu0 %v1229_v25  ;;  %v1285_v22 = vpack.c.bf16 %v645_v16, %v642_v15  ;;  %v1287_v23 = vpack.c.bf16 %v652_v19, %v649_v17  ;;  %v648_v24 = vld [vmem:[#allocation9 + $0x120] sm:$0xff]  ;;  %v651_v25 = vld [vmem:[#allocation9 + $0x138] sm:$0xff]  ;;  %v1305_v27 = vpack.c.bf16 %v635_v21, %v632_v20  ;;  %v658_v28 = vld [vmem:[#allocation9 + $0x170] sm:$0xff]  ;;  %v451_v11 = vshrl.u32 %v450_v10, 7 }
  0xcd   : > { %1264 = vmatprep.subr.bf16.mxu0 %v1263_v26  ;;  %1262 = vmatpush1.bf16.msra.mxu1 %v1261_v53  ;;  %v655_v26 = vld [vmem:[#allocation9 + $0x158] sm:$0xff]  ;;  %v638_v29 = vld [vmem:[#allocation9 + $0xd0] sm:$0xff]  ;;  %v641_v30 = vld [vmem:[#allocation9 + $0xe8] sm:$0xff]  ;;  %v1289_v31 = vpack.c.bf16 %v651_v25, %v648_v24 }
  0xce   : > { %1295 = vmatprep.subr.bf16.mxu1 %v1720_v0  ;;  %v1291_v32 = vpack.c.bf16 %v658_v28, %v655_v26  ;;  %v654_v33 = vld [vmem:[#allocation9 + $0x150] sm:$0xff]  ;;  %v657_v34 = vld [vmem:[#allocation9 + $0x168] sm:$0xff]  ;;  %v1308_v35 = vpack.c.bf16 %v641_v30, %v638_v29  ;;  %v644_v36 = vld [vmem:[#allocation9 + $0x100] sm:$0xff]  ;;  %v452_v12 = vsub.s32 0, %v451_v11  ;;  %v460_v26 = vsub.s32 2, %v451_v11 }
  0xcf   : > { %535 = vmatmul.mubr.f32.vlgmr.msra.gmra.mrb[0].mxu0 %v382_v37  ;;  %v650_v40 = vld [vmem:[#allocation9 + $0x130] sm:$0xff]  ;;  %v653_v41 = vld [vmem:[#allocation9 + $0x148] sm:$0xff]  ;;  %v2014_v42 = vld [vmem:[#allocation2] sm:$0xff] }
  0xd0   : > { %1266 = vmatpush1.bf16.msra.mxu0 %v1265_v38  ;;  %724 = vmatprep.mubr.f32.mxu0 %v1719_v8  ;;  %v1293_v38 = vpack.c.bf16 %v657_v34, %v654_v33  ;;  %v1314_v43 = vpack.c.bf16 %v653_v41, %v650_v40  ;;  %v656_v44 = vld [vmem:[#allocation9 + $0x160] sm:$0xff]  ;;  %v659_v45 = vld [vmem:[#allocation9 + $0x178] sm:$0xff]  ;;  %v832_v50 = vld [vmem:[#allocation11 + $0x10] sm:$0xff] }
  0xd1   : > { %1268 = vmatprep.subr.bf16.mxu0 %v1267_v39  ;;  %606 = vmatmul.mubr.f32.vlgmr.msra.gmra.mrb[0].mxu1 %v382_v37  ;;  %v647_v37 = vld [vmem:[#allocation9 + $0x118] sm:$0xff]  ;;  %v1317_v46 = vpack.c.bf16 %v659_v45, %v656_v44  ;;  %v830_v47 = vld [vmem:[#allocation11] sm:$0xff]  ;;  %v835_v53 = vld [vmem:[#allocation11 + $0x28] sm:$0xff] }
  0xd2   : > { %1297 = vmatpush3.bf16.msra.mxu1 %v1296_v62  ;;  %1161 = vmatprep.mubr.msk.f32.mxu1 %vm1721_vm0, %v1719_v8  ;;  %v1311_v39 = vpack.c.bf16 %v647_v37, %v644_v36  ;;  %v833_v51 = vld [vmem:[#allocation11 + $0x18] sm:$0xff]  ;;  %v836_v55 = vld [vmem:[#allocation11 + $0x30] sm:$0xff]  ;;  %v839_v59 = vld [vmem:[#allocation11 + $0x48] sm:$0xff] }
  0xd3   : > { %1298 = vmatprep.subr.bf16.mxu1 %v1720_v0  ;;  %v1323_v52 = vpack.c.bf16 %v833_v51, %v832_v50  ;;  %v837_v56 = vld [vmem:[#allocation11 + $0x38] sm:$0xff]  ;;  %v840_v61 = vld [vmem:[#allocation11 + $0x50] sm:$0xff]  ;;  %v842_v1 = vld [vmem:[#allocation11 + $0x60] sm:$0xff] }
  0xd4   : > { %1270 = vmatpush1.bf16.msra.mxu0 %v1269_v48  ;;  %v831_v48 = vld [vmem:[#allocation11 + $0x8] sm:$0xff]  ;;  %v841_v62 = vld [vmem:[#allocation11 + $0x58] sm:$0xff]  ;;  %v1087_v28 = vld [vmem:[%s2108_s5] ss:$0 sm:$0xff] }
  0xd5   : > { %1272 = vmatprep.subr.bf16.mxu0 %v1271_v49  ;;  %v1320_v49 = vpack.c.bf16 %v831_v48, %v830_v47  ;;  %v1335_v63 = vpack.c.bf16 %v841_v62, %v840_v61  ;;  %v843_v2 = vld [vmem:[#allocation11 + $0x68] sm:$0xff]  ;;  %v845_v5 = vld [vmem:[#allocation11 + $0x78] sm:$0xff] }
  0xd6   : > { %1300 = vmatpush3.bf16.msra.mxu1 %v1299_v9 }
  0xd7   : > { %1301 = vmatprep.subr.bf16.mxu1 %v1720_v0 }
  0xd8   : > { %1274 = vmatpush1.bf16.msra.mxu0 %v1273_v57  ;;  %v1329_v57 = vpack.c.bf16 %v837_v56, %v836_v55 }
  0xd9   : > { %1276 = vmatprep.subr.bf16.mxu0 %v1275_v58  ;;  %v838_v58 = vld [vmem:[#allocation11 + $0x40] sm:$0xff] }
  0xda   : > { %1303 = vmatpush3.bf16.msra.mxu1 %v1302_v18  ;;  %v1332_v60 = vpack.c.bf16 %v839_v59, %v838_v58 }
  0xdb   : > { %1304 = vmatprep.subr.bf16.mxu1 %v1720_v0 }
  0xdc   : > { %1278 = vmatpush1.bf16.msra.mxu0 %v1277_v3  ;;  %v1338_v3 = vpack.c.bf16 %v843_v2, %v842_v1 }
  0xdd   : > { %1280 = vmatprep.subr.bf16.mxu0 %v1279_v4  ;;  %v844_v4 = vld [vmem:[#allocation11 + $0x70] sm:$0xff] }
  0xde   : > { %1306 = vmatpush3.bf16.msra.mxu1 %v1305_v27  ;;  %v1341_v6 = vpack.c.bf16 %v845_v5, %v844_v4 }
  0xdf   : > { %1307 = vmatprep.subr.bf16.mxu1 %v1720_v0 }
  0xe0   : > { %1282 = vmatpush1.bf16.msra.mxu0 %v1281_v13  ;;  %v448_v13 = vld [vmem:[%s2106_s3] sm:$0xf] }
  0xe1   : > { %1284 = vmatprep.subr.bf16.mxu0 %v1283_v14  ;;  %v456_v14 = vsub.s32 1, %v451_v11  ;;  %v453_v15 = vrot.slane %v448_v13, %v452_v12  ;;  %v461_v29 = vrot.slane %v448_v13, %v460_v26 }
  0xe2   : > { %1309 = vmatpush3.bf16.msra.mxu1 %v1308_v35 }
  0xe3   : > { %1310 = vmatprep.subr.bf16.mxu1 %v1720_v0  ;;  %v457_v17 = vrot.slane %v448_v13, %v456_v14 }
  0xe4   : > { %1286 = vmatpush1.bf16.msra.mxu0 %v1285_v22 }
  0xe5   : > { %1288 = vmatprep.subr.bf16.mxu0 %v1287_v23 }
  0xe6   : > { %1312 = vmatpush3.bf16.msra.mxu1 %v1311_v39 }
  0xe7   : > { %1313 = vmatprep.subr.bf16.mxu1 %v1720_v0 }
  0xe8   : > { %1290 = vmatpush1.bf16.msra.mxu0 %v1289_v31 }
  0xe9   : > { %1292 = vmatprep.subr.bf16.mxu0 %v1291_v32 }
  0xea   : > { %1315 = vmatpush3.bf16.msra.mxu1 %v1314_v43  ;;  %v464_v43 = vsub.s32 3, %v451_v11 }
  0xeb   : > { %1316 = vmatprep.subr.bf16.mxu1 %v1720_v0 }
  0xec   : > { %1294 = vmatpush1.bf16.msra.mxu0 %v1293_v38  ;;  %v465_v44 = vrot.slane %v448_v13, %v464_v43 }
  0xed   : > { %1319 = vmatprep.subr.bf16.mxu0 %v1720_v0 }
  0xee   : > { %1318 = vmatpush3.bf16.msra.mxu1 %v1317_v46 }
  0xef   : > { %725 = vmatmul.mubr.f32.vlgmr.msra.gmra.mrb[0].mxu0 %v2014_v42 }
  0xf0   : > { %1196 = vmatprep.mubr.msk.f32.mxu0 %vm1721_vm0, %v1719_v8  ;;  %1321 = vmatpush3.bf16.msra.mxu0 %v1320_v49  ;;  %v834_v8 = vld [vmem:[#allocation11 + $0x20] sm:$0xff] }
  0xf1   : > { %1162 = vmatmul.mubr.f32.vlgmr.msra.gmra.mrb[2].mxu1 %v2014_v42  ;;  %1322 = vmatprep.subr.bf16.mxu0 %v1720_v0  ;;  %v1326_v54 = vpack.c.bf16 %v835_v53, %v834_v8 }
  0xf4   : > { %1324 = vmatpush3.bf16.msra.mxu0 %v1323_v52 }
  0xf5   : > { %1325 = vmatprep.subr.bf16.mxu0 %v1720_v0 }
  0xf8   : > { %1327 = vmatpush3.bf16.msra.mxu0 %v1326_v54 }
  0xf9   : > { %1328 = vmatprep.subr.bf16.mxu0 %v1720_v0 }
  0xfc   : > { %1330 = vmatpush3.bf16.msra.mxu0 %v1329_v57 }
  0xfd   : > { %1331 = vmatprep.subr.bf16.mxu0 %v1720_v0 }
 0x100   : > { %1333 = vmatpush3.bf16.msra.mxu0 %v1332_v60 }
 0x101   : > { %1334 = vmatprep.subr.bf16.mxu0 %v1720_v0 }
 0x104   : > { %1336 = vmatpush3.bf16.msra.mxu0 %v1335_v63 }
 0x105   : > { %1337 = vmatprep.subr.bf16.mxu0 %v1720_v0 }
 0x108   : > { %1339 = vmatpush3.bf16.msra.mxu0 %v1338_v3 }
 0x109   : > { %1340 = vmatprep.subr.bf16.mxu0 %v1720_v0 }
 0x10c   : > { %1342 = vmatpush3.bf16.msra.mxu0 %v1341_v6 }
 0x1a4   : > { %v607_v7 = vpop.f32.mrb[0].mxu1 }
 0x1a5   : > { %v609_v9 = vpop.f32.mrb[1].mxu1  ;;  %v608_v33 = vadd.f32 %v607_v7, %v461_v29 }
 0x1a6   : > { %v610_v45 = vadd.f32 %v609_v9, %v465_v44 }
 0x1c2   : > { %v726_v16 = vpop.f32.mrb[0].mxu0 }
 0x1c3   : > { %v1343_v18 = vadd.f32 %v726_v16, %v453_v15  ;;  %v728_v19 = vpop.f32.mrb[1].mxu0 }
 0x1c4   : > { %v1344_v21 = vadd.f32 %v728_v19, %v457_v17  ;;  %v797_v22 = vpop.f32.mrb[2].mxu1 }
 0x1c5   : > { %v1085_v20 = vmul.f32 -1.442695, %v1343_v18  ;;  %v1163_v23 = vpop.f32.mrb[3].mxu1  ;;  %v822_v31 = vadd.f32 %v1087_v28, %v797_v22 }
 0x1c6   : > { %v1086_v0 = vmul.f32 -1.442695, %v1344_v21 }
 0x1c7   : > { %1450 = vpow2.f32 %v1085_v20 }
 0x1c8   : > { %1452 = vpow2.f32 %v1086_v0 }
 0x1d1   : > { %v1451_v24 = vpop.eup %1450 }
 0x1d2   : > { %v805_v25 = vadd.f32 1.0, %v1451_v24  ;;  %v1453_v27 = vpop.eup %1452 }
 0x1d3   : > { %v812_v30 = vadd.f32 1.0, %v1453_v27 }
 0x1d4   : > { %1454 = vrcp.f32 %v805_v25 }
 0x1d5   : > { %1456 = vrcp.f32 %v812_v30 }
 0x1de   : > { %v1455_v32 = vpop.eup %1454 }
 0x1df   : > { %v823_v34 = vmul.f32 %v1455_v32, %v822_v31  ;;  %v1457_v36 = vpop.eup %1456 }
 0x1e0   : > { %v826_v37 = vsub.f32 1.0, %v1457_v36  ;;  %v828_v40 = vmul.f32 %v1457_v36, %v2014_v42 }
 0x1e1   : > { %v824_v35 = vadd.f32 %v823_v34, %v608_v33 }
 0x1e3   : > { %1458 = vtanh.f32 %v824_v35 }
 0x1ed   : > { %v1459_v38 = vpop.eup %1458 }
 0x1ee   : > { %v827_v39 = vmul.f32 %v1459_v38, %v826_v37 }
 0x1f0   : > { %v829_v41 = vadd.f32 %v828_v40, %v827_v39 }
 0x1f2   : > { %1197 = vmatmul.mubr.f32.vlgmr.msra.gmra.mrb[2].mxu0 %v829_v41  ;;  %917 = vst [vmem:[#allocation2] sm:$0xff] %v829_v41  ;;  %923 = vst [vmem:[#allocation13] sm:$0xff] (!%p1088_p6), %v829_v41 }
 0x2c2   : > { %922 = sbr.rel (%p1088_p6) target bundleno = 713 (0x2c9), region = 76 }
 0x2c5   : > { %v912_v46 = vpop.f32.mrb[2].mxu0 }
 0x2c6   : > { %v916_v47 = vadd.f32 %v912_v46, %v610_v45  ;;  %v1198_v48 = vpop.f32.mrb[3].mxu0 }
 0x2c8   : > { %918 = vst [vmem:[%s1998_s12] sm:$0xff] %v916_v47 }
 0x2c9 PF: > { %s1090_s19 = sshll.u32 %s1790_s11, 7  ;;  %s938_s17 = sshll.u32 %s1998_s12, 4  ;;  %s939_s17 = int_to_ptr.vmem [resolvable:$true] %s938_s17 }
 0x2ca   : > { %s2043_s14 = scalar_lea.hbm %s2110_s7, %s1090_s19  ;;  %s925_s10 = scalar_lea.sflag [#allocation5], %s1980_s1 }
 0x2cb   : > { %s1602_s15 = scalar_lea.vmem %s939_s17, 128  ;;  %p2133_p12 = scmp.ne.s32.totalorder %s2124_s22, 0 }
 0x2cc   : > { %p1603_p11 = scmp.ne.s32.totalorder %s939_s17, %s1602_s15  ;;  %s1722_s23 = smov [#allocation12]  }
 0x2cd   : > { %s1606_s16 = sshll.u32 %s1722_s23, 4  ;;  %s1607_s16 = int_to_ptr.vmem [resolvable:$false] %s1606_s16 }
 0x2ce   : > { %p1604_p5 = pnand %p1603_p11, %p2133_p12  ;;  %s1608_s25 = scalar_lea.vmem %s1607_s16, 256 }
 0x2cf   : > { %p1609_p3 = scmp.lt.s32.totalorder %s939_s17, %s1607_s16  ;;  %p1610_p1 = scmp.lt.s32.totalorder %s1608_s25, %s1602_s15 }
 0x2d0   : > { %p1605_p7 = pneg %p1604_p5 }
 0x2d1   : > { %p1611_p4 = por %p1610_p1, %p1609_p3 }
 0x2d3   : > { %p1612_p10 = pnand %p1611_p4, %p1605_p7 }
 0x2d5   : > { %1615 = shalt.err (!%p1612_p10)
}
 0x2d6   : > { %s1616_s1 = scalar_lea.hbm %s2043_s14, 128  ;;  %s1620_s18 = scalar_lea.hbm %s2110_s7, 1024 }
 0x2d7   : > { %p1617_p13 = scmp.ne.s32.totalorder %s2043_s14, %s1616_s1  ;;  %p1621_p8 = scmp.lt.u32.totalorder %s2043_s14, %s2110_s7 }
 0x2d8   : > { %p1622_p9 = scmp.lt.u32.totalorder %s1620_s18, %s1616_s1  ;;  %p1624_p11 = scmp.lt.u32.totalorder %s1616_s1, %s2043_s14 }
 0x2d9   : > { %p1618_p0 = pnand %p1617_p13, %p2133_p12 }
 0x2da   : > { %p1623_p6 = por %p1622_p9, %p1621_p8 }
 0x2db   : > { %p1619_p2 = pneg %p1618_p0 }
 0x2dc   : > { %p1625_p5 = por %p1624_p11, %p1623_p6 }
 0x2de   : > { %p1626_p7 = pnand %p1625_p5, %p1619_p2 }
 0x2e0   : > { %1629 = shalt.err (!%p1626_p7)
}
 0x2e1   : > { %1365 = dma.vmem_to_hbm [thread:$0]  (%p2133_p12), %s939_s17, 128, %s2043_s14, %s925_s10  }
 0x2e2   : > { %s1723_s26 = smov [#allocation13]   ;;  %p2134_p1 = scmp.eq.s32.totalorder %s1790_s11, 7 }
 0x2e3   : > { %s949_s15 = sshll.u32 %s1723_s26, 4  ;;  %s950_s15 = int_to_ptr.vmem [resolvable:$true] %s949_s15 }
 0x2e4   : > { %s1630_s23 = scalar_lea.vmem %s950_s15, 128  ;;  %p1637_p13 = scmp.lt.s32.totalorder %s950_s15, %s950_s15 }
 0x2e5   : > { %p1631_p3 = scmp.ne.s32.totalorder %s950_s15, %s1630_s23  ;;  %p1638_p0 = scmp.lt.s32.totalorder %s1630_s23, %s1630_s23 }
 0x2e7   : > { %p1632_p4 = pnand %p1631_p3, %p2134_p1  ;;  %p1639_p8 = por %p1638_p0, %p1637_p13 }
 0x2e9   : > { %p1633_p10 = pneg %p1632_p4 }
 0x2eb   : > { %p1640_p9 = pnand %p1639_p8, %p1633_p10 }
 0x2ed   : > { %1643 = shalt.err (!%p1640_p9)
}
 0x2ee   : > { %s1644_s22 = scalar_lea.hbm %s2111_s8, 128  ;;  %p2135_p2 = pmov %p2134_p1 }
 0x2ef   : > { %p1645_p12 = scmp.ne.s32.totalorder %s2111_s8, %s1644_s22  ;;  %p1650_p5 = scmp.lt.u32.totalorder %s1644_s22, %s2111_s8 }
 0x2f1   : > { %p1646_p6 = pnand %p1645_p12, %p2135_p2 }
 0x2f3   : > { %p1647_p11 = pneg %p1646_p6 }
 0x2f5   : > { %p1652_p7 = pnand %p1650_p5, %p1647_p11 }
 0x2f7   : > { %1655 = shalt.err (!%p1652_p7)
}
 0x2f8   : > { %p2136_p3 = pmov %p2134_p1 }
 0x2fa   : > { %1367 = dma.vmem_to_hbm [thread:$0]  (%p2136_p3), %s950_s15, 128, %s2111_s8, [#allocation14]  }
 0x2fb   : > { %1685 = dma.done.wait (%p2134_p1), [#allocation14], 128   ;;  %p2137_p4 = pmov %p2134_p1 }
 0x2fd   : > { %1687 = vsyncadd (%p2137_p4), [#allocation14], 4294967168 }
 0x2fe PF: > { %p1403_p10 = scmp.ge.s32.totalorder %s1706_s30, 2  ;;  %s965_s18 = sand.u32 1, %s1694_s27  }
 0x2ff   : > { %p2138_p13 = scmp.ne.s32.totalorder %s2125_s24, 0  ;;  %s966_s19 = scalar_lea.sflag [#allocation5], %s965_s18 }
 0x301   : > { %p1389_p0 = pnand %p1403_p10, %p2138_p13 }
 0x303   : > { %1689 = dma.done.wait (!%p1389_p0), %s966_s19, 128  }
 0x304   : > { %1691 = vsyncadd (!%p1389_p0), %s966_s19, 4294967168  ;;  %p25_p8 = scmp.ge.s32.totalorder %s1902_s13, 10   ;;  %s2139_s27 = smov %s1698_s28 }
 0x305   : > { %s2140_s28 = smov %s1702_s29  ;;  %s2141_s29 = smov %s1913_s20 }
 0x306   : > { %s2142_s30 = smov %s1902_s13  ;;  %27 = sbr.rel (!%p25_p8) target bundleno = 10 (0xa), region = 125 }
 0x30d   :  { %971 = vsyncpa [#allocation4], 1 }
 0x30e   :  { %973 = vsyncpa [#allocation4 + $0x1], 1 }
 0x30f   :  { %974 = vsyncpa [#allocation7], 1 }
 0x310   :  { %975 = vsyncpa [#allocation10], 1 }
 0x311   :  { %976 = vsyncpa [#allocation5], 1 }
 0x312   :  { %978 = vsyncpa [#allocation5 + $0x1], 1 }
 0x313   :  { %979 = vsyncpa [#allocation14], 1 }

</bundles_post_ra>
